<compile_context>
chip_gen: v7x
topology: tpu7x:2x2x1
jax: 0.10.0
libtpu: 0.0.40
codegen_flags: <defaults>
</compile_context>

<pallas_src>
import functools

import jax
import jax.numpy as jnp
from jax.experimental import pallas as pl
from jax.experimental.pallas import tpu as pltpu


_VMEM_LIMIT = 32 * 1024 * 1024            # right-sized; fits every generation's scoped budget
_FUSED_MAX_BLOCK_BYTES = 4 * 1024 * 1024  # largest x block the fused single-pass kernel may use


def _round_up(x, m):
    return (x + m - 1) // m * m


def _target_block_bytes():
    """~2 MiB blocks on v5e/v6e (>=85% of HBM roofline per measured scaling),
    ~4 MiB on v7x where the ~0.35us/step overhead is pricier at 3.2 TB/s."""
    try:
        kind = jax.devices()[0].device_kind.lower()
        if "v7" in kind or "7x" in kind:
            return 4 * 1024 * 1024
    except Exception:
        pass
    return 2 * 1024 * 1024


def _choose_tiles(R, L, itemsize, target_bytes):
    """Pick (row_tile, lane_tile) for a (R, L) 2-D view aiming at ~target_bytes blocks."""
    pack = max(8, 32 // itemsize)            # packed sublane tile: 8 f32 / 16 bf16 / 32 int8
    # Row tile: full R when small (a block dim equal to the array dim is always
    # legal); otherwise multiples of the packed sublane tile.
    tr = R if R <= pack else pack            # provisional; re-grown below
    # Lane tile: whole rows when they fit; otherwise lane-dense 128-multiples
    # sized from the ACTUAL row tile (fixes the small-R ~64 KiB block bug).
    if L * itemsize * max(tr, 1) <= target_bytes:
        tl = L
    else:
        tl = (target_bytes // (max(tr, 1) * itemsize)) // 128 * 128
        tl = max(128, min(tl, _round_up(L, 128)))
    # Grow the row tile up to the block budget (multiples of `pack`).
    if R > pack:
        tr = target_bytes // (tl * itemsize)
        tr = max(pack, min(tr // pack * pack, _round_up(R, pack)))
    return tr, tl


# ------------------------------ Pallas kernels ----------------------------- #

def _fused_norm_kernel(x_ref, o_ref, *, eps):
    """Single-pass group normalization: each (n, g) row of the block is one full
    normalization group (reduction span resident in VMEM). No affine."""
    x = x_ref[...].astype(jnp.float32)                       # (tn, tg, L)
    mean = jnp.mean(x, axis=-1, keepdims=True)
    xc = x - mean
    var = jnp.mean(xc * xc, axis=-1, keepdims=True)          # centered: no cancellation
    o_ref[...] = (xc * jax.lax.rsqrt(var + eps)).astype(o_ref.dtype)


def _fused_affine_norm_kernel(x_ref, g_ref, t_ref, o_ref, *, eps):
    """Fused normalization with a per-(group, lane) affine (gamma/beta are one
    sample's worth of data, resident across the batch sweep)."""
    x = x_ref[...].astype(jnp.float32)                       # (tn, tg, L)
    mean = jnp.mean(x, axis=-1, keepdims=True)
    xc = x - mean
    var = jnp.mean(xc * xc, axis=-1, keepdims=True)
    y = xc * jax.lax.rsqrt(var + eps)
    o_ref[...] = (y * g_ref[...] + t_ref[...]).astype(o_ref.dtype)


def _row_stats_kernel(x_ref, sum_ref, sq_ref, *, true_l, lane_tile, needs_mask):
    """Accumulate per-row sum and sum-of-squares across the lane-chunk grid axis.
    Only the tail lane chunk is masked (VALU ops stay off the other chunks)."""
    k = pl.program_id(1)

    @pl.when(k == 0)
    def _():
        sum_ref[...] = jnp.zeros_like(sum_ref)
        sq_ref[...] = jnp.zeros_like(sq_ref)

    x = x_ref[...].astype(jnp.float32)

    def accumulate(xv):
        sum_ref[...] += jnp.sum(xv, axis=-1, keepdims=True)
        sq_ref[...] += jnp.sum(xv * xv, axis=-1, keepdims=True)

    if needs_mask:
        last = pl.num_programs(1) - 1

        @pl.when(k != last)
        def _():
            accumulate(x)

        @pl.when(k == last)
        def _():
            lane = jax.lax.broadcasted_iota(jnp.int32, x.shape, 1) + k * lane_tile
            accumulate(jnp.where(lane < true_l, x, 0.0))
    else:
        accumulate(x)


def _row_apply_kernel(x_ref, a_ref, b_ref, o_ref):
    """y = x * a_row + b_row (per-row scale/shift only; no identity lane streams)."""
    x = x_ref[...].astype(jnp.float32)
    o_ref[...] = (x * a_ref[...] + b_ref[...]).astype(o_ref.dtype)


def _row_apply_affine_kernel(x_ref, a_ref, b_ref, g_ref, t_ref, o_ref):
    """y = (x * a_row + b_row) * g_lane + t_lane (layer-mode learned-affine fallback)."""
    x = x_ref[...].astype(jnp.float32)
    y = x * a_ref[...] + b_ref[...]
    y = y * g_ref[...].astype(jnp.float32) + t_ref[...].astype(jnp.float32)
    o_ref[...] = y.astype(o_ref.dtype)


# ------------------------------ kernel drivers ----------------------------- #

def _fused_group_norm(x3, gamma3, beta3, eps, out_dtype, target_bytes):
    """Single-pass normalization of a (N, Gdim, L) view; each (n, g) row is one group."""
    Nn, Gdim, L = x3.shape
    isz = x3.dtype.itemsize
    row_bytes = L * isz
    if Gdim * row_bytes <= target_bytes:
        tg = Gdim                                            # full dim: always legal
    else:
        tg = min(Gdim, max(8, (target_bytes // row_bytes) // 8 * 8))
    tn = max(1, min(Nn, target_bytes // max(1, tg * row_bytes)))
    # Group axis slow, batch axis fast: gamma/beta blocks stay resident across
    # the inner batch sweep (no re-fetch per step).
    grid = (pl.cdiv(Gdim, tg), pl.cdiv(Nn, tn))
    x_spec = pl.BlockSpec((tn, tg, L), lambda j, i: (i, j, 0))

    if gamma3 is None:
        kernel = functools.partial(_fused_norm_kernel, eps=eps)
        in_specs = [x_spec]
        args = (x3,)
    else:
        kernel = functools.partial(_fused_affine_norm_kernel, eps=eps)
        gb_spec = pl.BlockSpec((1, tg, L), lambda j, i: (0, j, 0))
        in_specs = [x_spec, gb_spec, gb_spec]
        args = (x3, gamma3, beta3)

    return pl.pallas_call(
        kernel,
        out_shape=jax.ShapeDtypeStruct((Nn, Gdim, L), out_dtype),
        grid_spec=pltpu.PrefetchScalarGridSpec(
            num_scalar_prefetch=0, grid=grid,
            in_specs=in_specs, out_specs=x_spec),
        compiler_params=pltpu.CompilerParams(
            dimension_semantics=("parallel", "parallel"),
            vmem_limit_bytes=_VMEM_LIMIT),
    )(*args)


def _row_partial_stats(x2d, target_bytes):
    """Per-row sum and sum-of-squares (float32) of a 2-D view."""
    R, L = x2d.shape
    tr, tl = _choose_tiles(R, L, x2d.dtype.itemsize, target_bytes)
    grid = (pl.cdiv(R, tr), pl.cdiv(L, tl))
    needs_mask = grid[1] * tl != L
    kernel = functools.partial(_row_stats_kernel, true_l=L, lane_tile=tl,
                               needs_mask=needs_mask)
    # TODO(synk): when R collapses to a single row tile (layer-mode fallback with
    # tiny N) the reduction serializes on one TensorCore on v7x; a two-stage
    # (R, n_chunks) partial-sum layout would feed both cores.
    s, ss = pl.pallas_call(
        kernel,
        out_shape=(jax.ShapeDtypeStruct((R, 1), jnp.float32),
                   jax.ShapeDtypeStruct((R, 1), jnp.float32)),
        grid_spec=pltpu.PrefetchScalarGridSpec(
            num_scalar_prefetch=0,
            grid=grid,
            in_specs=[pl.BlockSpec((tr, tl), lambda i, k: (i, k))],
            out_specs=(pl.BlockSpec((tr, 1), lambda i, k: (i, 0)),
                       pl.BlockSpec((tr, 1), lambda i, k: (i, 0))),
        ),
        compiler_params=pltpu.CompilerParams(
            dimension_semantics=("parallel", "arbitrary"),
            vmem_limit_bytes=_VMEM_LIMIT),
    )(x2d)
    return s[:, 0], ss[:, 0]


def _row_affine_apply(x2d, a_row, b_row, out_dtype, target_bytes,
                      g_lane=None, t_lane=None):
    """y = x * a_row + b_row (optionally followed by * g_lane + t_lane)."""
    R, L = x2d.shape
    tr, tl = _choose_tiles(R, L, x2d.dtype.itemsize, target_bytes)
    grid = (pl.cdiv(R, tr), pl.cdiv(L, tl))
    row_spec = pl.BlockSpec((tr, 1), lambda i, k: (i, 0))
    x_spec = pl.BlockSpec((tr, tl), lambda i, k: (i, k))

    if g_lane is None:
        kernel = _row_apply_kernel
        in_specs = [x_spec, row_spec, row_spec]
        args = (x2d, a_row, b_row)
    else:
        kernel = _row_apply_affine_kernel
        lane_spec = pl.BlockSpec((1, tl), lambda i, k: (0, k))
        in_specs = [x_spec, row_spec, row_spec, lane_spec, lane_spec]
        args = (x2d, a_row, b_row, g_lane, t_lane)

    return pl.pallas_call(
        kernel,
        out_shape=jax.ShapeDtypeStruct((R, L), out_dtype),
        grid_spec=pltpu.PrefetchScalarGridSpec(
            num_scalar_prefetch=0, grid=grid,
            in_specs=in_specs, out_specs=x_spec),
        compiler_params=pltpu.CompilerParams(
            dimension_semantics=("parallel", "parallel"),
            vmem_limit_bytes=_VMEM_LIMIT),
    )(*args)


# ------------------------------- norm forward ------------------------------ #

def norm_forward(x, mode, weight=None, bias=None, eps=1e-5, gn_num_groups=32):
    """Normalize an NCHW tensor.  weight/bias may be None (identity affine,
    which is what a freshly-constructed torch normalizer computes), or (C,)
    for batch/group/instance, (C, H, W) for layer."""
    N, C, H, W = x.shape
    HW = H * W
    NC = N * C
    target = _target_block_bytes()

    def finish(sum_, sq_, cnt):
        mean = sum_ / cnt
        # TODO(synk): fallback path uses clamped E[x^2]-mean^2; tight parity for
        # huge-mean activations would need a shifted/Welford accumulation.
        var = jnp.maximum(sq_ / cnt - mean * mean, 0.0)
        return mean, jax.lax.rsqrt(var + eps)

    if mode == 'batch':
        # TODO(synk): training-mode batch statistics only; eval-mode running
        # stats / momentum / track_running_stats bookkeeping are not modeled.
        xr = x.reshape(NC, HW)
        s, ss = _row_partial_stats(xr, target)
        mean, inv = finish(jnp.sum(s.reshape(N, C), axis=0),
                           jnp.sum(ss.reshape(N, C), axis=0), N * HW)       # (C,)
        w = jnp.ones((C,), jnp.float32) if weight is None else weight.reshape(C).astype(jnp.float32)
        b = jnp.zeros((C,), jnp.float32) if bias is None else bias.reshape(C).astype(jnp.float32)
        scale = inv * w
        shift = b - mean * scale
        scale_row = jnp.broadcast_to(scale[None, :], (N, C)).reshape(NC, 1)
        shift_row = jnp.broadcast_to(shift[None, :], (N, C)).reshape(NC, 1)
        y = _row_affine_apply(xr, scale_row, shift_row, x.dtype, target)
        return y.reshape(N, C, H, W)

    # Per-(n, group) modes: rows of the (N, Gdim, L) view are whole groups.
    if mode == 'instance':
        Gdim, L = C, HW
    elif mode == 'group':
        G = gn_num_groups
        if C % G != 0:
            raise ValueError(f'gn_num_groups={G} must divide num channels C={C}')
        Gdim, L = G, (C // G) * HW
    elif mode == 'layer':
        Gdim, L = 1, C * HW
    else:
        raise KeyError(mode)

    isz = x.dtype.itemsize
    fused_ok = min(Gdim, 8) * L * isz <= _FUSED_MAX_BLOCK_BYTES

    if fused_ok:
        x3 = x.reshape(N, Gdim, L)
        if weight is None and bias is None:
            y = _fused_group_norm(x3, None, None, eps, x.dtype, target)
        else:
            wf = (jnp.ones((C,) if mode != 'layer' else (C, H, W), jnp.float32)
                  if weight is None else weight.astype(jnp.float32))
            bf = (jnp.zeros((C,) if mode != 'layer' else (C, H, W), jnp.float32)
                  if bias is None else bias.astype(jnp.float32))
            if mode == 'instance':
                gamma3 = jnp.broadcast_to(wf.reshape(1, C, 1), (1, C, HW))
                beta3 = jnp.broadcast_to(bf.reshape(1, C, 1), (1, C, HW))
            elif mode == 'group':
                Cg = C // Gdim
                gamma3 = jnp.broadcast_to(wf.reshape(1, Gdim, Cg, 1),
                                          (1, Gdim, Cg, HW)).reshape(1, Gdim, L)
                beta3 = jnp.broadcast_to(bf.reshape(1, Gdim, Cg, 1),
                                         (1, Gdim, Cg, HW)).reshape(1, Gdim, L)
            else:  # layer
                gamma3 = wf.reshape(1, 1, L)
                beta3 = bf.reshape(1, 1, L)
            y = _fused_group_norm(x3, gamma3, beta3, eps, x.dtype, target)
        return y.reshape(N, C, H, W)

    # ------- two-pass fallback (reduction span does not fit one block) ------- #
    xr = x.reshape(NC, HW)
    s, ss = _row_partial_stats(xr, target)                                   # (NC,)

    if mode == 'instance':
        mean, inv = finish(s, ss, HW)                                        # (NC,)
        w = jnp.ones((C,), jnp.float32) if weight is None else weight.reshape(C).astype(jnp.float32)
        b = jnp.zeros((C,), jnp.float32) if bias is None else bias.reshape(C).astype(jnp.float32)
        w_r = jnp.broadcast_to(w[None, :], (N, C)).reshape(NC)
        b_r = jnp.broadcast_to(b[None, :], (N, C)).reshape(NC)
        scale_row = (inv * w_r).reshape(NC, 1)
        shift_row = (b_r - mean * inv * w_r).reshape(NC, 1)
        y = _row_affine_apply(xr, scale_row, shift_row, x.dtype, target)
        return y.reshape(N, C, H, W)

    if mode == 'group':
        Cg = C // Gdim
        mean, inv = finish(jnp.sum(s.reshape(N, Gdim, Cg), axis=2),
                           jnp.sum(ss.reshape(N, Gdim, Cg), axis=2), Cg * HW)  # (N, G)
        mean_c = jnp.repeat(mean, Cg, axis=1)                                 # (N, C)
        inv_c = jnp.repeat(inv, Cg, axis=1)
        w = jnp.ones((C,), jnp.float32) if weight is None else weight.reshape(C).astype(jnp.float32)
        b = jnp.zeros((C,), jnp.float32) if bias is None else bias.reshape(C).astype(jnp.float32)
        scale = inv_c * w[None, :]
        shift = b[None, :] - mean_c * scale
        y = _row_affine_apply(xr, scale.reshape(NC, 1), shift.reshape(NC, 1),
                              x.dtype, target)
        return y.reshape(N, C, H, W)

    # layer
    mean, inv = finish(jnp.sum(s.reshape(N, C), axis=1),
                       jnp.sum(ss.reshape(N, C), axis=1), C * HW)             # (N,)
    if weight is None and bias is None:
        # Per-row apply on the (N*C, HW) view keeps plenty of parallel row tiles.
        a_row = jnp.broadcast_to(inv[:, None], (N, C)).reshape(NC, 1)
        b_row = jnp.broadcast_to((-mean * inv)[:, None], (N, C)).reshape(NC, 1)
        y = _row_affine_apply(xr, a_row, b_row, x.dtype, target)
        return y.reshape(N, C, H, W)
    wf = (jnp.ones((C, H, W), jnp.float32) if weight is None else weight.astype(jnp.float32))
    bf = (jnp.zeros((C, H, W), jnp.float32) if bias is None else bias.astype(jnp.float32))
    y = _row_affine_apply(x.reshape(N, C * HW), inv.reshape(N, 1),
                          (-mean * inv).reshape(N, 1), x.dtype, target,
                          g_lane=wf.reshape(1, C * HW), t_lane=bf.reshape(1, C * HW))
    return y.reshape(N, C, H, W)


# -------------------------------- norm factory ------------------------------ #

class norm:
    """JAX/Pallas equivalent of the PyTorch `norm` factory module.

    Calling the instance with `num_features` (mirrors `forward(num_features)`)
    returns a normalizer function for NCHW tensors.
    """

    def __init__(self, mode='batch', eps=1e-05, momentum=0.1, weight=True, bias=True,
                 track_running_stats=True, gn_num_groups=32, verbose=False, **kwargs):
        if mode not in ['batch', 'group', 'layer', 'instance', 'none']:
            raise KeyError('mode options include: "batch" | "group" | "layer" | "instance" | "none"')
        if verbose:
            print('INFO:Pallas: Normalizer is {}'.format(mode))
        self.mode = mode
        self.eps = eps
        self.momentum = momentum              # running-stat bookkeeping only (not forward output)
        self.weight = weight
        self.bias = bias
        self.affine = weight and bias
        if not self.affine and verbose:
            print('affine not used in norm layer')
        self.track_running_stats = track_running_stats
        self.gn_num_groups = gn_num_groups

    def __call__(self, num_features):
        if self.mode == 'none':
            return lambda x: x                # Identity

        mode, eps, G = self.mode, self.eps, self.gn_num_groups

        def normalizer(x):
            N, C, H, W = x.shape
            assert C == num_features
            # Freshly-constructed torch normalizers carry default affine params
            # (ones / zeros) -> mathematically the identity affine, so the fused
            # no-affine kernels are exact. (affine=False configurations produce
            # the same output.)
            return norm_forward(x, mode, weight=None, bias=None, eps=eps,
                                gn_num_groups=G)

        return jax.jit(normalizer)


# ---------------------------------- reference -------------------------------- #

def _ref_norm(x, axes, eps):
    mean = jnp.mean(x, axis=axes, keepdims=True)
    var = jnp.mean((x - mean) ** 2, axis=axes, keepdims=True)
    return (x - mean) * jax.lax.rsqrt(var + eps)


if __name__ == "__main__":
    key = jax.random.PRNGKey(0)
    N, C, H, W = 2, 4, 16, 16
    x = jax.random.normal(key, (N, C, H, W), dtype=jnp.float32)
    eps = 1e-5

    # batch (training-mode batch statistics)
    y_bn = jax.block_until_ready(norm(mode='batch', eps=eps)(C)(x))
    ref_bn = _ref_norm(x, (0, 2, 3), eps)
    assert jnp.allclose(y_bn, ref_bn, atol=1e-4, rtol=1e-4)

    # group (gn_num_groups must divide C; use 2 for C=4)
    y_gn = jax.block_until_ready(norm(mode='group', eps=eps, gn_num_groups=2)(C)(x))
    ref_gn = _ref_norm(x.reshape(N, 2, C // 2, H, W), (2, 3, 4), eps).reshape(N, C, H, W)
    assert jnp.allclose(y_gn, ref_gn, atol=1e-4, rtol=1e-4)

    # layer
    y_ln = jax.block_until_ready(norm(mode='layer', eps=eps)(C)(x))
    ref_ln = _ref_norm(x, (1, 2, 3), eps)
    assert jnp.allclose(y_ln, ref_ln, atol=1e-4, rtol=1e-4)

    # instance
    y_in = jax.block_until_ready(norm(mode='instance', eps=eps)(C)(x))
    ref_in = _ref_norm(x, (2, 3), eps)
    assert jnp.allclose(y_in, ref_in, atol=1e-4, rtol=1e-4)

    # none (identity)
    y_id = jax.block_until_ready(norm(mode='none')(C)(x))
    assert jnp.array_equal(y_id, x)

    print("KERNEL_OK")
</pallas_src>

<mosaic_0001>
module attributes {stable_mosaic.version = 11 : i64} {
  func.func @_row_stats_kernel(%arg0: i32, %arg1: i32, %arg2: memref<8x256xf32, #tpu.memory_space<vmem>>, %arg3: memref<8x1xf32, #tpu.memory_space<vmem>>, %arg4: memref<8x1xf32, #tpu.memory_space<vmem>>) attributes {dimension_semantics = [#tpu.dimension_semantics<parallel>, #tpu.dimension_semantics<arbitrary>], iteration_bounds = array<i64: 1, 1>, scalar_prefetch = 0 : i64, scratch_operands = 0 : i64, tpu.core_type = #tpu.core_type<tc>, window_params = [{transform_indices = @transform_0, window_bounds = array<i64: 8, 256>}, {transform_indices = @transform_1, window_bounds = array<i64: 8, 1>}, {transform_indices = @transform_2, window_bounds = array<i64: 8, 1>}]} {
    %c0_i32 = arith.constant 0 : i32
    %0 = arith.cmpi eq, %arg1, %c0_i32 : i32
    %1 = arith.extui %0 : i1 to i32
    %c0_i32_0 = arith.constant 0 : i32
    %2 = arith.cmpi ne, %1, %c0_i32_0 : i32
    scf.if %2 {
      %cst_11 = arith.constant 0.000000e+00 : f32
      %15 = vector.broadcast %cst_11 : f32 to vector<8x1xf32>
      %c0_12 = arith.constant 0 : index
      %c0_13 = arith.constant 0 : index
      %16 = vector.load %arg3[%c0_12, %c0_13] : memref<8x1xf32, #tpu.memory_space<vmem>>, vector<8x1xf32>
      tpu.vector_store %arg3[%c0_12, %c0_13], %15 {strides = array<i32>} : memref<8x1xf32, #tpu.memory_space<vmem>>, vector<8x1xf32>,
      %cst_14 = arith.constant 0.000000e+00 : f32
      %17 = vector.broadcast %cst_14 : f32 to vector<8x1xf32>
      %c0_15 = arith.constant 0 : index
      %c0_16 = arith.constant 0 : index
      %18 = vector.load %arg4[%c0_15, %c0_16] : memref<8x1xf32, #tpu.memory_space<vmem>>, vector<8x1xf32>
      tpu.vector_store %arg4[%c0_15, %c0_16], %17 {strides = array<i32>} : memref<8x1xf32, #tpu.memory_space<vmem>>, vector<8x1xf32>,
    } else {
    }
    %c0 = arith.constant 0 : index
    %c0_1 = arith.constant 0 : index
    %3 = vector.load %arg2[%c0, %c0_1] : memref<8x256xf32, #tpu.memory_space<vmem>>, vector<8x256xf32>
    %c0_2 = arith.constant 0 : index
    %c0_3 = arith.constant 0 : index
    %4 = vector.load %arg3[%c0_2, %c0_3] : memref<8x1xf32, #tpu.memory_space<vmem>>, vector<8x1xf32>
    %cst = arith.constant dense<0.000000e+00> : vector<8xf32>
    %5 = vector.multi_reduction <add>, %3, %cst [1] : vector<8x256xf32> to vector<8xf32>
    %6 = vector.shape_cast %5 : vector<8xf32> to vector<8x1xf32>
    %7 = arith.addf %4, %6 : vector<8x1xf32>
    %c0_4 = arith.constant 0 : index
    %c0_5 = arith.constant 0 : index
    %8 = vector.load %arg3[%c0_4, %c0_5] : memref<8x1xf32, #tpu.memory_space<vmem>>, vector<8x1xf32>
    tpu.vector_store %arg3[%c0_4, %c0_5], %7 {strides = array<i32>} : memref<8x1xf32, #tpu.memory_space<vmem>>, vector<8x1xf32>,
    %c0_6 = arith.constant 0 : index
    %c0_7 = arith.constant 0 : index
    %9 = vector.load %arg4[%c0_6, %c0_7] : memref<8x1xf32, #tpu.memory_space<vmem>>, vector<8x1xf32>
    %10 = arith.mulf %3, %3 : vector<8x256xf32>
    %cst_8 = arith.constant dense<0.000000e+00> : vector<8xf32>
    %11 = vector.multi_reduction <add>, %10, %cst_8 [1] : vector<8x256xf32> to vector<8xf32>
    %12 = vector.shape_cast %11 : vector<8xf32> to vector<8x1xf32>
    %13 = arith.addf %9, %12 : vector<8x1xf32>
    %c0_9 = arith.constant 0 : index
    %c0_10 = arith.constant 0 : index
    %14 = vector.load %arg4[%c0_9, %c0_10] : memref<8x1xf32, #tpu.memory_space<vmem>>, vector<8x1xf32>
    tpu.vector_store %arg4[%c0_9, %c0_10], %13 {strides = array<i32>} : memref<8x1xf32, #tpu.memory_space<vmem>>, vector<8x1xf32>,
    return
  }
  func.func @transform_0(%arg0: i32, %arg1: i32) -> (i32, i32) {
    %c0_i32 = arith.constant 0 : i32
    return %arg0, %arg1 : i32, i32
  }
  func.func @transform_1(%arg0: i32, %arg1: i32) -> (i32, i32) {
    %c0_i32 = arith.constant 0 : i32
    %c0_i32_0 = arith.constant 0 : i32
    return %arg0, %c0_i32 : i32, i32
  }
  func.func @transform_2(%arg0: i32, %arg1: i32) -> (i32, i32) {
    %c0_i32 = arith.constant 0 : i32
    %c0_i32_0 = arith.constant 0 : i32
    return %arg0, %c0_i32 : i32, i32
  }
}

module attributes {stable_mosaic.version = 11 : i64} {
  func.func @_row_apply_kernel(%arg0: i32, %arg1: i32, %arg2: memref<8x256xf32, #tpu.memory_space<vmem>>, %arg3: memref<8x1xf32, #tpu.memory_space<vmem>>, %arg4: memref<8x1xf32, #tpu.memory_space<vmem>>, %arg5: memref<8x256xf32, #tpu.memory_space<vmem>>) attributes {dimension_semantics = [#tpu.dimension_semantics<parallel>, #tpu.dimension_semantics<parallel>], iteration_bounds = array<i64: 1, 1>, scalar_prefetch = 0 : i64, scratch_operands = 0 : i64, tpu.core_type = #tpu.core_type<tc>, window_params = [{transform_indices = @transform_0, window_bounds = array<i64: 8, 256>}, {transform_indices = @transform_1, window_bounds = array<i64: 8, 1>}, {transform_indices = @transform_2, window_bounds = array<i64: 8, 1>}, {transform_indices = @transform_3, window_bounds = array<i64: 8, 256>}]} {
    %c0 = arith.constant 0 : index
    %c0_0 = arith.constant 0 : index
    %0 = vector.load %arg2[%c0, %c0_0] : memref<8x256xf32, #tpu.memory_space<vmem>>, vector<8x256xf32>
    %c0_1 = arith.constant 0 : index
    %c0_2 = arith.constant 0 : index
    %1 = vector.load %arg3[%c0_1, %c0_2] : memref<8x1xf32, #tpu.memory_space<vmem>>, vector<8x1xf32>
    %2 = vector.broadcast %1 : vector<8x1xf32> to vector<8x256xf32>
    %3 = arith.mulf %0, %2 : vector<8x256xf32>
    %c0_3 = arith.constant 0 : index
    %c0_4 = arith.constant 0 : index
    %4 = vector.load %arg4[%c0_3, %c0_4] : memref<8x1xf32, #tpu.memory_space<vmem>>, vector<8x1xf32>
    %5 = vector.broadcast %4 : vector<8x1xf32> to vector<8x256xf32>
    %6 = arith.addf %3, %5 : vector<8x256xf32>
    %c0_5 = arith.constant 0 : index
    %c0_6 = arith.constant 0 : index
    %7 = vector.load %arg5[%c0_5, %c0_6] : memref<8x256xf32, #tpu.memory_space<vmem>>, vector<8x256xf32>
    tpu.vector_store %arg5[%c0_5, %c0_6], %6 {strides = array<i32>} : memref<8x256xf32, #tpu.memory_space<vmem>>, vector<8x256xf32>,
    return
  }
  func.func @transform_0(%arg0: i32, %arg1: i32) -> (i32, i32) {
    %c0_i32 = arith.constant 0 : i32
    return %arg0, %arg1 : i32, i32
  }
  func.func @transform_1(%arg0: i32, %arg1: i32) -> (i32, i32) {
    %c0_i32 = arith.constant 0 : i32
    %c0_i32_0 = arith.constant 0 : i32
    return %arg0, %c0_i32 : i32, i32
  }
  func.func @transform_2(%arg0: i32, %arg1: i32) -> (i32, i32) {
    %c0_i32 = arith.constant 0 : i32
    %c0_i32_0 = arith.constant 0 : i32
    return %arg0, %c0_i32 : i32, i32
  }
  func.func @transform_3(%arg0: i32, %arg1: i32) -> (i32, i32) {
    %c0_i32 = arith.constant 0 : i32
    return %arg0, %arg1 : i32, i32
  }
}

</mosaic_0001>

<bundles_post_ra>
// kernel: squeeze.2
= control target key start
LH: loop header
LB: loop body
LE: loop exit
PB: predicated region body
PF: predicated region fallthrough
CT: control target
= control target key end

     0   :  { %vm7_vm0 = vcmask 31744   ;;  %s39_s0 = inlined_call_operand.vmem [shape: f32[8], index: 0, kind: input, shape index: {}]   ;;  %s40_s1 = inlined_call_operand.vmem [shape: f32[2,4], index: 1, kind: output, shape index: {}]  }
   0x1   :  { %v4_v0 = vld [vmem:[%s39_s0] sm:$0x1]  ;;  %s22_s0 = smov 124  }
   0x2   :  { %5 = vst [vmem:[#allocation1] sm:$0x1] %v4_v0 }
   0x9   :  { %v9_v1 = vld [vmem:[#allocation1] sm:$0x1]  }
   0xa   :  { %v6_v2 = vld [vmem:[#allocation1] sm:$0x1]   ;;  %10 = vrot.lane.b32.xlu0 %v9_v1, %s22_s0 }
   0xb   :  { %8 = vst.msk [vmem:[#allocation0] sm:$0x1] %vm7_vm0, %v6_v2  }
  0x7c   :  { %v11_v3 = vpop.permute.xlu0 %10  }
  0x7d   :  { %14 = vst.msk [vmem:[#allocation0 + $0x1] sm:$0x1] %vm7_vm0, %v11_v3  }
  0x84   :  { %v18_v4 = vld [vmem:[#allocation0] sm:$0x3] }
  0x85   :  { %20 = vst [vmem:[%s40_s1] sm:$0x3] %v18_v4 }

// kernel: normalizer.2
= control target key start
LH: loop header
LB: loop body
LE: loop exit
PB: predicated region body
PF: predicated region fallthrough
CT: control target
= control target key end

     0   :  { %vm14_vm0 = vcmask 7168   ;;  %v43_v2 = vmov 0.0   ;;  %s87_s0 = inlined_call_operand.vmem [shape: f32[8,256], index: 0, kind: input, shape index: {}]   ;;  %s88_s1 = inlined_call_operand.vmem [shape: f32[8,1], index: 1, kind: output, shape index: {0}]   ;;  %s89_s2 = inlined_call_operand.vmem [shape: f32[8,1], index: 2, kind: output, shape index: {1}]  }
   0x1   :  { %v17_v0 = vld [vmem:[%s87_s0] sm:$0xff]  ;;  %v18_v1 = vld [vmem:[%s87_s0 + $0x8] sm:$0xff]  ;;  %15 = vst.msk [vmem:[%s88_s1] sm:$0xff] %vm14_vm0, %v43_v2  ;;  %16 = vst.msk [vmem:[%s89_s2] sm:$0xff] %vm14_vm0, %v43_v2 }
   0x2   :  { %v20_v3 = vadd.f32 %v18_v1, %v17_v0  ;;  %v27_v4 = vmul.f32 %v17_v0, %v17_v0  ;;  %v28_v5 = vmul.f32 %v18_v1, %v18_v1 }
   0x4   :  { %21 = vadd.xlane.f32.xlu0 %v20_v3  ;;  %v29_v6 = vadd.f32 %v28_v5, %v27_v4 }
   0x8   :  { %30 = vadd.xlane.f32.xlu0 %v29_v6  ;;  %v19_v7 = vld [vmem:[%s88_s1] sm:$0xff] }
   0x9   :  { %v26_v10 = vld [vmem:[%s89_s2] sm:$0xff] }
  0x91   :  { %v22_v8 = vpop.xlane.xlu0 %21 }
  0x92   :  { %v23_v9 = vadd.f32 %v22_v8, %v19_v7 }
  0x94   :  { %25 = vst.msk [vmem:[%s88_s1] sm:$0xff] %vm14_vm0, %v23_v9 }
  0x95   :  { %v31_v11 = vpop.xlane.xlu0 %30 }
  0x96   :  { %v32_v12 = vadd.f32 %v31_v11, %v26_v10 }
  0x98   :  { %33 = vst.msk [vmem:[%s89_s2] sm:$0xff] %vm14_vm0, %v32_v12 }

// kernel: normalizer.3
= control target key start
LH: loop header
LB: loop body
LE: loop exit
PB: predicated region body
PF: predicated region fallthrough
CT: control target
= control target key end

     0   :  { %v40_v0 = vmov 0   ;;  %s79_s1 = inlined_call_operand.vmem [shape: f32[8,1], index: 1, kind: input, shape index: {}]   ;;  %s80_s2 = inlined_call_operand.vmem [shape: f32[8,1], index: 2, kind: input, shape index: {}]   ;;  %s81_s0 = inlined_call_operand.vmem [shape: f32[8,256], index: 0, kind: input, shape index: {}]   ;;  %s82_s3 = inlined_call_operand.vmem [shape: f32[8,256], index: 3, kind: output, shape index: {}]  }
   0x1   :  { %39 = vset.pattern.permute.xlu0 %v40_v0  ;;  %v16_v1 = vld [vmem:[%s79_s1] sm:$0xff]  ;;  %v15_v5 = vld [vmem:[%s81_s0 + $0x8] sm:$0xff] }
   0x2   :  { %19 = vperm.xlu0 %39, %v16_v1   ;;  %v24_v2 = vld [vmem:[%s80_s2] sm:$0xff] }
   0x3   :  { %v14_v4 = vld [vmem:[%s81_s0] sm:$0xff] }
   0x6   :  { %27 = vperm.xlu0 %39, %v24_v2  }
  0x81   :  { %v20_v3 = vpop.permute.xlu0 %19 }
  0x82   :  { %v22_v6 = vmul.f32 %v20_v3, %v14_v4  ;;  %v23_v7 = vmul.f32 %v20_v3, %v15_v5 }
  0x85   :  { %v28_v8 = vpop.permute.xlu0 %27 }
  0x86   :  { %v30_v9 = vadd.f32 %v28_v8, %v22_v6  ;;  %v31_v10 = vadd.f32 %v28_v8, %v23_v7 }
  0x88   :  { %32 = vst [vmem:[%s82_s3] sm:$0xff] %v30_v9  ;;  %33 = vst [vmem:[%s82_s3 + $0x8] sm:$0xff] %v31_v10 }

</bundles_post_ra>
